<compile_context>
chip_gen: v5e
topology: v5e:2x2
jax: 0.10.0
libtpu: 0.0.40
codegen_flags: <defaults>
</compile_context>

<pallas_src>
import jax
import jax.numpy as jnp
from jax import lax
from jax.experimental import pallas as pl
from jax.experimental.pallas import tpu as pltpu

_LANES = 128
_D_CHUNK = 512  # lanes per reduction chunk (bounds the f32 mul-reduce temporary)


def _round_up(x, m):
    return ((x + m - 1) // m) * m


def _linear_kernel(x_ref, w_ref, b_ref, o_ref):
    """One batch tile of y = X @ W.T + b.

    x_ref: (sub, 128, D) VMEM  -- sub*128 rows of X; row r is (r//128, r%128, :)
    w_ref: (1, D)        VMEM  -- lane-dense weight row (resident across tiles)
    b_ref: (1, 1)        SMEM  -- bias scalar
    o_ref: (1, sub, 128) VMEM  -- lane-dense per-row results
    """
    sub, lanes, d = x_ref.shape
    n_full = d // _D_CHUNK
    rem = d - n_full * _D_CHUNK

    acc = jnp.zeros((sub, lanes), jnp.float32)

    # Chunked VPU multiply + XLU lane reduction (MXU skipped on purpose: N=1
    # matvec, memory-bound kernel).  Chunking keeps the f32 product temporary
    # bounded to (sub, 128, _D_CHUNK) regardless of how big the tile grows.
    def chunk_body(c, acc):
        lo = pl.multiple_of(c * _D_CHUNK, _D_CHUNK)
        xc = x_ref[:, :, pl.ds(lo, _D_CHUNK)].astype(jnp.float32)   # (sub,128,CH)
        wc = w_ref[:, pl.ds(lo, _D_CHUNK)].astype(jnp.float32)      # (1,CH)
        return acc + jnp.sum(xc * wc, axis=-1)                      # (sub,128)

    if n_full > 0:
        acc = lax.fori_loop(0, n_full, chunk_body, acc)
    if rem > 0:
        xc = x_ref[:, :, n_full * _D_CHUNK:].astype(jnp.float32)
        wc = w_ref[:, n_full * _D_CHUNK:].astype(jnp.float32)
        acc = acc + jnp.sum(xc * wc, axis=-1)

    acc = acc + b_ref[0, 0]
    o_ref[...] = acc[None].astype(o_ref.dtype)


def _pick_row_groups(d, itemsize, n_row_groups):
    """Pick sub (row groups of 128 rows per tile) and the scoped VMEM limit."""
    try:
        vmem_cap = pltpu.get_tpu_info().vmem_capacity_bytes
    except Exception:
        vmem_cap = 64 * 1024 * 1024  # conservative fallback (v7x per-TC VMEM)
    # Leave headroom below physical VMEM; never ask for more than 64 MiB scoped.
    vmem_limit = min((vmem_cap * 3) // 4, 64 * 1024 * 1024)
    # Per-buffer X budget: Pallas double-buffers the X tile; reserve the rest of
    # the limit for the output double-buffer, the resident weight row and slack.
    x_buf_budget = min((vmem_limit * 2) // 5, 16 * 1024 * 1024)
    sub = max(1, x_buf_budget // (_LANES * d * itemsize))
    sub = min(sub, n_row_groups)
    # Keep >= 2 grid steps when possible so the "parallel" batch axis can split
    # across v7x's two TensorCores (and the pipeline has more than one step).
    if sub >= n_row_groups and n_row_groups >= 2:
        sub = -(-n_row_groups // 2)
    return sub, vmem_limit


def linear_regression_forward(x, weight, bias, *, block_rows=None):
    """y = x @ weight.T + bias, weight (1, D), bias (1,). Returns (B, 1)."""
    B, D = x.shape
    itemsize = jnp.dtype(x.dtype).itemsize

    # Pad only to a 128-row multiple (needed for the free dimension-split
    # reshape below).  When B % 128 == 0 (common case) no copy happens at all.
    b128 = _round_up(B, _LANES)
    if b128 != B:
        # TODO(synk): for huge, non-128-aligned B run the <128-row ragged tail in
        # a separate tiny step instead of this full-array pad copy.
        x = jnp.pad(x, ((0, b128 - B), (0, 0)))
    r128 = b128 // _LANES
    # Free (dimension-split) reshape: row r of X lives at (r // 128, r % 128, :).
    x3 = x.reshape(r128, _LANES, D)

    if block_rows is not None:
        sub = max(1, min(block_rows // _LANES, r128))
        vmem_limit = 64 * 1024 * 1024
    else:
        sub, vmem_limit = _pick_row_groups(D, itemsize, r128)

    num_tiles = pl.cdiv(r128, sub)  # ragged last tile allowed; junk rows sliced off

    w_row = weight.astype(x.dtype)                    # (1, D) lane-dense row
    b_smem = bias.reshape(1, 1).astype(jnp.float32)   # scalar carried in SMEM

    out_slab = pl.pallas_call(
        _linear_kernel,
        out_shape=jax.ShapeDtypeStruct((num_tiles, sub, _LANES), x.dtype),
        grid_spec=pltpu.PrefetchScalarGridSpec(
            num_scalar_prefetch=0,
            grid=(num_tiles,),
            in_specs=[
                pl.BlockSpec((sub, _LANES, D), lambda i: (i, 0, 0)),   # X tile (streamed)
                pl.BlockSpec((1, D), lambda i: (0, 0)),                # weight (resident)
                pl.BlockSpec(memory_space=pltpu.SMEM),                 # bias scalar
            ],
            out_specs=pl.BlockSpec((1, sub, _LANES), lambda i: (i, 0, 0)),
        ),
        compiler_params=pltpu.CompilerParams(
            dimension_semantics=("parallel",),   # v7x: shard batch axis over 2 TCs
            vmem_limit_bytes=vmem_limit,
        ),
        cost_estimate=pl.CostEstimate(
            flops=2 * b128 * D,
            transcendentals=0,
            bytes_accessed=itemsize * (b128 * D + D + num_tiles * sub * _LANES),
        ),
    )(x3, w_row, b_smem)

    # Lane-dense slab -> (B, 1).  Row order matches X row order; overhang rows
    # of the last partial tile (and the 128-pad rows) land past index B.
    return out_slab.reshape(num_tiles * sub * _LANES, 1)[:B]
    # TODO(synk): if D grows past ~32K (f32) add a reduction grid axis over D with
    # a VMEM f32 accumulator instead of loading full (sub*128, D) row blocks.


if __name__ == "__main__":
    key = jax.random.PRNGKey(0)
    kx, kw = jax.random.split(key)

    # Small demo shapes (LazyLinear infers D from the input): batch=8, in_features=32.
    B, D = 8, 32
    x = jax.random.normal(kx, (B, D), dtype=jnp.float32)

    # Deterministic parameter init matching the module:
    #   self.net.weight.data.normal_(0, 0.01); self.net.bias.data.fill_(0)
    weight = 0.01 * jax.random.normal(kw, (1, D), dtype=jnp.float32)
    bias = jnp.zeros((1,), dtype=jnp.float32)

    y = jax.block_until_ready(linear_regression_forward(x, weight, bias))
    y_ref = x @ weight.T + bias
    assert y.shape == (B, 1)
    assert jnp.allclose(y, y_ref, atol=1e-5, rtol=1e-5), "mismatch vs reference (small)"

    # Multi-tile path (128-aligned batch, >=2 grid steps, no padding copy).
    B2, D2 = 2304, 256
    kx2, kw2 = jax.random.split(jax.random.PRNGKey(1))
    x2 = jax.random.normal(kx2, (B2, D2), dtype=jnp.float32)
    w2 = 0.01 * jax.random.normal(kw2, (1, D2), dtype=jnp.float32)
    b2 = jnp.zeros((1,), dtype=jnp.float32)
    y2 = jax.block_until_ready(linear_regression_forward(x2, w2, b2))
    y2_ref = x2 @ w2.T + b2
    assert y2.shape == (B2, 1)
    assert jnp.allclose(y2, y2_ref, atol=1e-4, rtol=1e-4), "mismatch vs reference (tiled)"

    # Ragged path: batch not a multiple of 128 and tiles not dividing the batch.
    B3, D3 = 700, 640
    kx3, kw3 = jax.random.split(jax.random.PRNGKey(2))
    x3_in = jax.random.normal(kx3, (B3, D3), dtype=jnp.float32)
    w3 = 0.01 * jax.random.normal(kw3, (1, D3), dtype=jnp.float32)
    b3 = jnp.full((1,), 0.5, dtype=jnp.float32)
    y3 = jax.block_until_ready(
        linear_regression_forward(x3_in, w3, b3, block_rows=256))
    y3_ref = x3_in @ w3.T + b3
    assert y3.shape == (B3, 1)
    assert jnp.allclose(y3, y3_ref, atol=1e-4, rtol=1e-4), "mismatch vs reference (ragged)"

    print("KERNEL_OK")
</pallas_src>

<mosaic_0001>
module attributes {stable_mosaic.version = 11 : i64} {
  func.func @_linear_kernel(%arg0: i32, %arg1: memref<1x128x32xf32, #tpu.memory_space<vmem>>, %arg2: memref<1x32xf32, #tpu.memory_space<vmem>>, %arg3: memref<1x1xf32, #tpu.memory_space<smem>>, %arg4: memref<1x1x128xf32, #tpu.memory_space<vmem>>) attributes {dimension_semantics = [#tpu.dimension_semantics<parallel>], iteration_bounds = array<i64: 1>, scalar_prefetch = 0 : i64, scratch_operands = 0 : i64, tpu.core_type = #tpu.core_type<tc>, window_params = [{transform_indices = @transform_0, window_bounds = array<i64: 1, 128, 32>}, {pipeline_mode = #tpu.pipeline_mode<synchronous>, transform_indices = @transform_1, window_bounds = array<i64: 1, 32>}, {transform_indices = @transform_2, window_bounds = array<i64: 1, 1>}, {transform_indices = @transform_3, window_bounds = array<i64: 1, 1, 128>}]} {
    %cst = arith.constant 0.000000e+00 : f32
    %0 = vector.broadcast %cst : f32 to vector<1x128xf32>
    %c0 = arith.constant 0 : index
    %c0_0 = arith.constant 0 : index
    %c0_1 = arith.constant 0 : index
    %1 = vector.load %arg1[%c0, %c0_0, %c0_1] : memref<1x128x32xf32, #tpu.memory_space<vmem>>, vector<1x128x32xf32>
    %c0_2 = arith.constant 0 : index
    %c0_3 = arith.constant 0 : index
    %2 = vector.load %arg2[%c0_2, %c0_3] : memref<1x32xf32, #tpu.memory_space<vmem>>, vector<1x32xf32>
    %3 = vector.shape_cast %2 : vector<1x32xf32> to vector<1x1x32xf32>
    %4 = vector.broadcast %3 : vector<1x1x32xf32> to vector<1x128x32xf32>
    %5 = arith.mulf %1, %4 : vector<1x128x32xf32>
    %cst_4 = arith.constant dense<0.000000e+00> : vector<1x128xf32>
    %6 = vector.multi_reduction <add>, %5, %cst_4 [2] : vector<1x128x32xf32> to vector<1x128xf32>
    %7 = arith.addf %0, %6 : vector<1x128xf32>
    %c0_5 = arith.constant 0 : index
    %c0_6 = arith.constant 0 : index
    %8 = memref.load %arg3[%c0_5, %c0_6] : memref<1x1xf32, #tpu.memory_space<smem>>
    %9 = vector.broadcast %8 : f32 to vector<1x128xf32>
    %10 = arith.addf %7, %9 : vector<1x128xf32>
    %11 = vector.shape_cast %10 : vector<1x128xf32> to vector<1x1x128xf32>
    %c0_7 = arith.constant 0 : index
    %c0_8 = arith.constant 0 : index
    %c0_9 = arith.constant 0 : index
    %12 = vector.load %arg4[%c0_7, %c0_8, %c0_9] : memref<1x1x128xf32, #tpu.memory_space<vmem>>, vector<1x1x128xf32>
    tpu.vector_store %arg4[%c0_7, %c0_8, %c0_9], %11 {strides = array<i32>} : memref<1x1x128xf32, #tpu.memory_space<vmem>>, vector<1x1x128xf32>,
    return
  }
  func.func @transform_0(%arg0: i32) -> (i32, i32, i32) {
    %c0_i32 = arith.constant 0 : i32
    %c0_i32_0 = arith.constant 0 : i32
    %c0_i32_1 = arith.constant 0 : i32
    return %arg0, %c0_i32, %c0_i32_0 : i32, i32, i32
  }
  func.func @transform_1(%arg0: i32) -> (i32, i32) {
    %c0_i32 = arith.constant 0 : i32
    %c0_i32_0 = arith.constant 0 : i32
    %c0_i32_1 = arith.constant 0 : i32
    return %c0_i32, %c0_i32_0 : i32, i32
  }
  func.func @transform_2(%arg0: i32) -> (i32, i32) {
    %c0_i32 = arith.constant 0 : i32
    %c0_i32_0 = arith.constant 0 : i32
    %c0_i32_1 = arith.constant 0 : i32
    return %c0_i32, %c0_i32_0 : i32, i32
  }
  func.func @transform_3(%arg0: i32) -> (i32, i32, i32) {
    %c0_i32 = arith.constant 0 : i32
    %c0_i32_0 = arith.constant 0 : i32
    %c0_i32_1 = arith.constant 0 : i32
    return %arg0, %c0_i32, %c0_i32_0 : i32, i32, i32
  }
}

</mosaic_0001>

<bundles_post_ra>
// kernel: tpu_custom_call.1
= control target key start
LH: loop header
LB: loop body
LE: loop exit
PB: predicated region body
PF: predicated region fallthrough
CT: control target
= control target key end

     0   :  { %vm52_vm0 = vcmask 261120   ;;  %s408_s0 = inlined_call_operand.vmem [shape: f32[1,128,32], index: 0, kind: input, shape index: {}]   ;;  %s409_s1 = inlined_call_operand.vmem [shape: f32[1,32], index: 1, kind: input, shape index: {}]   ;;  %s410_s2 = inlined_call_operand.<no memory space> [shape: f32[1,1], index: 2, kind: input, shape index: {}]   ;;  %s411_s3 = inlined_call_operand.hbm [shape: f32[1,1,128], index: 3, kind: output, shape index: {}]  }
   0x1   :  { %v16_v0 = vld [vmem:[%s408_s0] sm:$0xff]  ;;  %v18_v2 = vld [vmem:[%s408_s0 + $0x10] sm:$0xff]  ;;  %v17_v7 = vld [vmem:[%s408_s0 + $0x8] sm:$0xff] }
   0x2   :  { %v287_v1 = vld [vmem:[%s409_s1] ss:$0 sm:$0xff]  ;;  %v19_v8 = vld [vmem:[%s408_s0 + $0x18] sm:$0xff]  ;;  %v21_v12 = vld [vmem:[%s408_s0 + $0x28] sm:$0xff] }
   0x3   :  { %v20_v3 = vld [vmem:[%s408_s0 + $0x20] sm:$0xff]  ;;  %v36_v4 = vmul.f32 %v287_v1, %v16_v0  ;;  %v38_v5 = vmul.f32 %v287_v1, %v18_v2  ;;  %v37_v13 = vmul.f32 %v287_v1, %v17_v7  ;;  %v39_v14 = vmul.f32 %v287_v1, %v19_v8 }
   0x4   :  { %v40_v6 = vmul.f32 %v287_v1, %v20_v3 }
   0x5   :  { %v53_v9 = vsel %vm52_vm0, %v36_v4, 0.0  ;;  %v59_v10 = vsel %vm52_vm0, %v38_v5, 0.0 }
   0x6   :  { %v65_v11 = vsel %vm52_vm0, %v40_v6, 0.0  ;;  %54 = vadd.xlane.f32.xlu0 %v53_v9  ;;  %60 = vadd.xlane.f32.xlu1 %v59_v10 }
   0x7   :  { %66 = vadd.xlane.f32.xlu2 %v65_v11 }
   0x8   :  { %9 = vsyncpa [#allocation4], 0  ;;  %v41_v15 = vmul.f32 %v287_v1, %v21_v12  ;;  %v56_v16 = vsel %vm52_vm0, %v37_v13, 0.0  ;;  %v62_v17 = vsel %vm52_vm0, %v39_v14, 0.0  ;;  %v22_v19 = vld [vmem:[%s408_s0 + $0x30] sm:$0xff]  ;;  %v23_v20 = vld [vmem:[%s408_s0 + $0x38] sm:$0xff]  ;;  %v151_v51 = vlaneseq }
   0x9   :  { %v24_v21 = vld [vmem:[%s408_s0 + $0x40] sm:$0xff]  ;;  %v42_v22 = vmul.f32 %v287_v1, %v22_v19  ;;  %v43_v23 = vmul.f32 %v287_v1, %v23_v20  ;;  %v25_v28 = vld [vmem:[%s408_s0 + $0x48] sm:$0xff]  ;;  %v26_v29 = vld [vmem:[%s408_s0 + $0x50] sm:$0xff]  ;;  %v369_v53 = vstv %s410_s2  ;;  %vm156_vm1 = vcmask 130112   ;;  %s223_s1 = sshll.u32 %s411_s3, 4  ;;  %s224_s1 = int_to_ptr.hbm [resolvable:$true] %s223_s1 }
   0xa   :  { %v68_v18 = vsel %vm52_vm0, %v41_v15, 0.0  ;;  %v44_v24 = vmul.f32 %v287_v1, %v24_v21  ;;  %v27_v30 = vld [vmem:[%s408_s0 + $0x58] sm:$0xff]  ;;  %v45_v31 = vmul.f32 %v287_v1, %v25_v28  ;;  %v46_v32 = vmul.f32 %v287_v1, %v26_v29  ;;  %v28_v37 = vld [vmem:[%s408_s0 + $0x60] sm:$0xff]  ;;  %v29_v38 = vld [vmem:[%s408_s0 + $0x68] sm:$0xff] }
   0xb   :  { %v71_v25 = vsel %vm52_vm0, %v42_v22, 0.0  ;;  %v74_v26 = vsel %vm52_vm0, %v43_v23, 0.0  ;;  %v47_v33 = vmul.f32 %v287_v1, %v27_v30  ;;  %v30_v39 = vld [vmem:[%s408_s0 + $0x70] sm:$0xff]  ;;  %v48_v40 = vmul.f32 %v287_v1, %v28_v37  ;;  %v31_v46 = vld [vmem:[%s408_s0 + $0x78] sm:$0xff]  ;;  %s260_s0 = smov [#allocation3]  }
   0xc   :  { %v77_v27 = vsel %vm52_vm0, %v44_v24, 0.0  ;;  %v80_v34 = vsel %vm52_vm0, %v45_v31, 0.0  ;;  %v83_v35 = vsel %vm52_vm0, %v46_v32, 0.0  ;;  %v49_v41 = vmul.f32 %v287_v1, %v29_v38  ;;  %s221_s2 = sshll.u32 %s260_s0, 4  ;;  %s222_s2 = int_to_ptr.vmem [resolvable:$true] %s221_s2 }
   0xd   :  { %v86_v36 = vsel %vm52_vm0, %v47_v33, 0.0  ;;  %v50_v42 = vmul.f32 %v287_v1, %v30_v39  ;;  %v89_v43 = vsel %vm52_vm0, %v48_v40, 0.0  ;;  %v51_v47 = vmul.f32 %v287_v1, %v31_v46 }
   0xe   :  { %57 = vadd.xlane.f32.xlu0 %v56_v16  ;;  %63 = vadd.xlane.f32.xlu1 %v62_v17  ;;  %v92_v44 = vsel %vm52_vm0, %v49_v41, 0.0  ;;  %v371_v54 = vand.u32 127, %v151_v51  ;;  %vm160_vm2 = vcmask 195712   ;;  %vm164_vm3 = vcmask 261312  }
   0xf   :  { %69 = vadd.xlane.f32.xlu2 %v68_v18  ;;  %v95_v45 = vsel %vm52_vm0, %v50_v42, 0.0  ;;  %v98_v48 = vsel %vm52_vm0, %v51_v47, 0.0  ;;  %vm168_vm4 = vcmask 326912   ;;  %vm172_vm5 = vcmask 392512  }
  0x10   :  { %v154_v56 = vadd.s32 4294967288, %v371_v54  ;;  %v158_v57 = vadd.s32 4294967280, %v371_v54  ;;  %v162_v62 = vadd.s32 4294967272, %v371_v54  ;;  %v166_v6 = vadd.s32 4294967264, %v371_v54 }
  0x11   :  { %v170_v9 = vadd.s32 4294967256, %v371_v54  ;;  %v174_v11 = vadd.s32 4294967248, %v371_v54  ;;  %v178_v19 = vadd.s32 4294967240, %v371_v54  ;;  %vm176_vm6 = vcmask 458112  }
  0x12   :  { %v182_v23 = vadd.s32 4294967232, %v371_v54  ;;  %vm180_vm7 = vcmask 523712   ;;  %vm184_vm8 = vcmask 589312   ;;  %vm188_vm9 = vcmask 654912  }
  0x13   :  { %v194_v38 = vadd.s32 4294967208, %v371_v54  ;;  %vm192_vm10 = vcmask 720512   ;;  %vm196_vm11 = vcmask 786112   ;;  %vm200_vm12 = vcmask 851712  }
  0x14   :  { %vm204_vm13 = vcmask 917312   ;;  %vm208_vm14 = vcmask 982912   ;;  %vm212_vm15 = vcmask 1048512  }
  0x16   :  { %72 = vadd.xlane.f32.xlu0 %v71_v25  ;;  %75 = vadd.xlane.f32.xlu1 %v74_v26 }
  0x17   :  { %78 = vadd.xlane.f32.xlu2 %v77_v27  ;;  %v186_v27 = vadd.s32 4294967224, %v371_v54 }
  0x1e   :  { %81 = vadd.xlane.f32.xlu0 %v80_v34  ;;  %84 = vadd.xlane.f32.xlu1 %v83_v35  ;;  %v190_v34 = vadd.s32 4294967216, %v371_v54 }
  0x1f   :  { %87 = vadd.xlane.f32.xlu2 %v86_v36 }
  0x26   :  { %90 = vadd.xlane.f32.xlu0 %v89_v43  ;;  %93 = vadd.xlane.f32.xlu1 %v92_v44  ;;  %v198_v43 = vadd.s32 4294967200, %v371_v54 }
  0x27   :  { %96 = vadd.xlane.f32.xlu2 %v95_v45 }
  0x2e   :  { %99 = vadd.xlane.f32.xlu0 %v98_v48  ;;  %v202_v48 = vadd.s32 4294967192, %v371_v54 }
  0x79   :  { %v55_v49 = vpop.xlane.xlu0 %54  ;;  %v61_v50 = vpop.xlane.xlu1 %60 }
  0x7a   :  { %v67_v52 = vpop.xlane.xlu2 %66  ;;  %v119_v55 = vadd.f32 %v369_v53, %v55_v49  ;;  %v121_v58 = vadd.f32 %v369_v53, %v61_v50 }
  0x7b   :  { %v123_v7 = vadd.f32 %v369_v53, %v67_v52 }
  0x7c   :  { %v153_v1 = vperm.slane %v119_v55, %v371_v54  ;;  %v159_v3 = vperm.slane %v121_v58, %v158_v57  ;;  %v206_v55 = vadd.s32 4294967184, %v371_v54 }
  0x7d   :  { %v167_v17 = vperm.slane %v123_v7, %v166_v6 }
  0x81   :  { %v58_v59 = vpop.xlane.xlu0 %57  ;;  %v64_v60 = vpop.xlane.xlu1 %63 }
  0x82   :  { %v120_v61 = vadd.f32 %v369_v53, %v58_v59  ;;  %v122_v63 = vadd.f32 %v369_v53, %v64_v60  ;;  %v70_v0 = vpop.xlane.xlu2 %69  ;;  %v210_v60 = vadd.s32 4294967176, %v371_v54 }
  0x83   :  { %v124_v10 = vadd.f32 %v369_v53, %v70_v0 }
  0x84   :  { %v155_v2 = vperm.slane %v120_v61, %v154_v56  ;;  %v163_v5 = vperm.slane %v122_v63, %v162_v62 }
  0x85   :  { %v171_v18 = vperm.slane %v124_v10, %v170_v9 }
  0x86   :  { %v157_v4 = vsel %vm156_vm1, %v155_v2, %v153_v1 }
  0x87   :  { %v161_v8 = vsel %vm160_vm2, %v159_v3, %v157_v4 }
  0x88   :  { %v165_v14 = vsel %vm164_vm3, %v163_v5, %v161_v8 }
  0x89   :  { %v73_v12 = vpop.xlane.xlu0 %72  ;;  %v76_v13 = vpop.xlane.xlu1 %75  ;;  %v169_v21 = vsel %vm168_vm4, %v167_v17, %v165_v14 }
  0x8a   :  { %v125_v15 = vadd.f32 %v369_v53, %v73_v12  ;;  %v79_v16 = vpop.xlane.xlu2 %78  ;;  %v126_v20 = vadd.f32 %v369_v53, %v76_v13  ;;  %v173_v25 = vsel %vm172_vm5, %v171_v18, %v169_v21 }
  0x8b   :  { %v127_v24 = vadd.f32 %v369_v53, %v79_v16 }
  0x8c   :  { %v175_v22 = vperm.slane %v125_v15, %v174_v11  ;;  %v179_v26 = vperm.slane %v126_v20, %v178_v19 }
  0x8d   :  { %v183_v33 = vperm.slane %v127_v24, %v182_v23 }
  0x8e   :  { %v177_v28 = vsel %vm176_vm6, %v175_v22, %v173_v25 }
  0x8f   :  { %v181_v36 = vsel %vm180_vm7, %v179_v26, %v177_v28 }
  0x90   :  { %v185_v40 = vsel %vm184_vm8, %v183_v33, %v181_v36 }
  0x91   :  { %v82_v29 = vpop.xlane.xlu0 %81  ;;  %v85_v30 = vpop.xlane.xlu1 %84 }
  0x92   :  { %v128_v31 = vadd.f32 %v369_v53, %v82_v29  ;;  %v88_v32 = vpop.xlane.xlu2 %87  ;;  %v129_v35 = vadd.f32 %v369_v53, %v85_v30 }
  0x93   :  { %v130_v39 = vadd.f32 %v369_v53, %v88_v32 }
  0x94   :  { %v187_v37 = vperm.slane %v128_v31, %v186_v27  ;;  %v191_v41 = vperm.slane %v129_v35, %v190_v34 }
  0x95   :  { %v195_v46 = vperm.slane %v130_v39, %v194_v38 }
  0x96   :  { %v189_v42 = vsel %vm188_vm9, %v187_v37, %v185_v40 }
  0x97   :  { %v193_v51 = vsel %vm192_vm10, %v191_v41, %v189_v42 }
  0x98   :  { %v197_v57 = vsel %vm196_vm11, %v195_v46, %v193_v51 }
  0x99   :  { %v91_v44 = vpop.xlane.xlu0 %90  ;;  %v94_v45 = vpop.xlane.xlu1 %93 }
  0x9a   :  { %v131_v47 = vadd.f32 %v369_v53, %v91_v44  ;;  %v132_v49 = vadd.f32 %v369_v53, %v94_v45  ;;  %v97_v50 = vpop.xlane.xlu2 %96 }
  0x9b   :  { %v133_v56 = vadd.f32 %v369_v53, %v97_v50 }
  0x9c   :  { %v199_v52 = vperm.slane %v131_v47, %v198_v43  ;;  %v203_v58 = vperm.slane %v132_v49, %v202_v48 }
  0x9d   :  { %v207_v61 = vperm.slane %v133_v56, %v206_v55 }
  0x9e   :  { %v201_v59 = vsel %vm200_vm12, %v199_v52, %v197_v57 }
  0x9f   :  { %v205_v63 = vsel %vm204_vm13, %v203_v58, %v201_v59 }
  0xa0   :  { %v209_v2 = vsel %vm208_vm14, %v207_v61, %v205_v63 }
  0xa1   :  { %v100_v62 = vpop.xlane.xlu0 %99 }
  0xa2   :  { %v134_v0 = vadd.f32 %v369_v53, %v100_v62 }
  0xa4   :  { %v211_v1 = vperm.slane %v134_v0, %v210_v60 }
  0xa6   :  { %v213_v3 = vsel %vm212_vm15, %v211_v1, %v209_v2 }
  0xa7   :  { %215 = vst [vmem:[#allocation3] sm:$0x1] %v213_v3 }
  0xa8   :  { %226 = dma.vmem_to_hbm [thread:$0]  %s222_s2, 16, %s224_s1, [#allocation4]  }
  0xa9   :  { %258 = dma.done.wait [#allocation4], 16  }
  0xaa   :  { %259 = vsyncadd [#allocation4], 4294967280 }
  0xab   :  { %231 = vsyncpa [#allocation4], 1 }

</bundles_post_ra>
